<compile_context>
chip_gen: v5e
topology: v5e:2x2
jax: 0.10.0
libtpu: 0.0.40
codegen_flags: <defaults>
</compile_context>

<pallas_src>
import functools

import numpy as np
import jax
import jax.numpy as jnp
from jax import lax
from jax.experimental import pallas as pl
from jax.experimental.pallas import tpu as pltpu

_LANE_COLS = 1024  # lane-dense last dim (8 * 128)


def _c32(v):
    """Python int -> wrapped int32 constant (two's-complement bit pattern)."""
    v = int(v) & 0xFFFFFFFF
    if v >= 1 << 31:
        v -= 1 << 32
    return jnp.int32(v)


def _lsr(x, n):
    """Logical right shift of int32 (arithmetic shift + mask)."""
    return (x >> n) & jnp.int32((1 << (32 - n)) - 1)


def _snp_kernel(seed_ref, img_ref, out_ref, *, thr31, mode):
    x = img_ref[...]

    if mode == "none":            # amount <= 0: nothing flipped
        out_ref[...] = x
        return
    if mode == "all":             # amount >= 1: every pixel set to 1
        out_ref[...] = jnp.ones_like(x)
        return

    tr, cols = x.shape
    # Global flat element index -> noise is independent of tile size / grid.
    r = lax.broadcasted_iota(jnp.int32, (tr, cols), 0)
    c = lax.broadcasted_iota(jnp.int32, (tr, cols), 1)
    base = pl.program_id(0) * jnp.int32(tr * cols)
    idx = base + r * jnp.int32(cols) + c

    # splitmix32-style hash of (index, seed); integer VPU ops only.
    h = idx ^ (seed_ref[0] * _c32(0x9E3779B9))
    h = (h ^ _lsr(h, 16)) * _c32(0x21F0AAAD)
    h = (h ^ _lsr(h, 15)) * _c32(0x735A2D97)
    h = h ^ _lsr(h, 15)

    # Bernoulli(amount) via an exact 31-bit integer threshold compare.
    u31 = _lsr(h, 1)                          # uniform int32 in [0, 2^31)
    flipped = u31 < jnp.int32(thr31)

    one = jnp.ones((), dtype=x.dtype)
    # Faithful to the reference: both salt and pepper pixels become 1.
    out_ref[...] = jnp.where(flipped, one, x)


def _tpu_budget():
    """(target block bytes, vmem_limit_bytes) per TPU generation."""
    try:
        kind = jax.devices()[0].device_kind.lower()
    except Exception:
        kind = ""
    if "v7" in kind:
        # 64 MiB VMEM per core: keep blocks <= ~5 MiB, scoped limit <= 48 MiB.
        return 5 << 20, 48 << 20
    if "v5" in kind or "v6" in kind:
        # 128 MiB VMEM: bigger blocks amortize per-grid-step overhead.
        return 12 << 20, 96 << 20
    return 8 << 20, 64 << 20


def _row_tile(rows, cols, itemsize, target_bytes):
    """Row-tile size: multiple of the sublane quantum, capped by target bytes,
    never falling back to an unbounded whole-array block."""
    sub = max(8, 32 // max(1, itemsize))       # f32:8, bf16:16, int8:32
    cap = max(sub, (target_bytes // (cols * itemsize)) // sub * sub)
    if rows > cap:
        return cap
    if rows >= 2 * sub:
        # Keep >= 2 grid steps so the "parallel" axis can shard across
        # TensorCores (v7x) and pipelining has something to overlap.
        half = -(-rows // 2)
        return -(-half // sub) * sub
    return rows                                 # full-extent block (allowed)


def snp(img, amount=0.25, ratio=0.25, seed=0):
    """Salt-and-pepper noise matching SNP(amount, ratio).forward(img).

    `ratio` is accepted for API parity but — exactly like the reference,
    which writes 1 for both salt and pepper — it does not affect the output.
    """
    del ratio
    x = jnp.asarray(img)                        # native dtype, no f32 upcast
    orig_shape = x.shape
    dtype = x.dtype
    itemsize = jnp.dtype(dtype).itemsize
    n = int(np.prod(orig_shape)) if orig_shape else 1

    # Reference's p==0 / p==1 special cases + exact 31-bit threshold otherwise.
    p = float(amount)
    if p <= 0.0:
        mode, thr31 = "none", 0
    elif p >= 1.0:
        mode, thr31 = "all", 0
    else:
        mode = "some"
        thr31 = min(max(int(round(p * (1 << 31))), 1), (1 << 31) - 1)

    cols = _LANE_COLS
    rows = -(-n // cols)
    target_bytes, vmem_limit = _tpu_budget()
    tr = _row_tile(rows, cols, itemsize, target_bytes)
    rows_pad = -(-rows // tr) * tr
    n_pad = rows_pad * cols

    flat = x.reshape(-1)
    if n_pad != n:
        flat = jnp.pad(flat, (0, n_pad - n))
    x2d = flat.reshape(rows_pad, cols)

    kernel = functools.partial(_snp_kernel, thr31=thr31, mode=mode)

    out2d = pl.pallas_call(
        kernel,
        out_shape=jax.ShapeDtypeStruct((rows_pad, cols), dtype),
        grid_spec=pltpu.PrefetchScalarGridSpec(
            num_scalar_prefetch=1,                      # seed lives in SMEM
            grid=(rows_pad // tr,),
            in_specs=[pl.BlockSpec((tr, cols), lambda i, *_: (i, 0))],
            out_specs=pl.BlockSpec((tr, cols), lambda i, *_: (i, 0)),
        ),
        compiler_params=pltpu.CompilerParams(
            dimension_semantics=("parallel",),
            vmem_limit_bytes=vmem_limit,
        ),
        cost_estimate=pl.CostEstimate(
            flops=22 * n_pad,
            transcendentals=0,
            bytes_accessed=2 * n_pad * itemsize,
        ),
        input_output_aliases={1: 0},                    # image -> output
    )(jnp.asarray([seed], dtype=jnp.int32), x2d)

    return out2d.reshape(-1)[:n].reshape(orig_shape)


if __name__ == "__main__":
    key = jax.random.PRNGKey(0)
    # Small image batch: N=2, C=4, H=W=16, values in [0, 1).
    img = jax.random.uniform(key, (2, 4, 16, 16), dtype=jnp.float32)

    out = snp(img, amount=0.25, ratio=0.25, seed=0)
    out = jax.block_until_ready(out)

    assert out.shape == img.shape and out.dtype == img.dtype
    changed = out != img
    # Every modified pixel must be exactly 1.0 (salt == pepper == 1 per spec).
    assert bool(jnp.all(jnp.where(changed, out == 1.0, True)))
    # Unchanged pixels must be bit-identical to the input.
    assert bool(jnp.all(jnp.where(changed, True, out == img)))
    # With amount=0.25 over 2048 pixels, some but not all pixels flip.
    n_changed = int(jnp.sum(changed))
    assert 0 < n_changed < changed.size

    print("KERNEL_OK")
</pallas_src>

<mosaic_0001>
module attributes {stable_mosaic.version = 11 : i64} {
  func.func @_snp_kernel(%arg0: i32, %arg1: memref<1xi32, #tpu.memory_space<smem>>, %arg2: memref<2x1024xf32, #tpu.memory_space<vmem>>, %arg3: memref<2x1024xf32, #tpu.memory_space<vmem>>) attributes {dimension_semantics = [#tpu.dimension_semantics<parallel>], iteration_bounds = array<i64: 1>, scalar_prefetch = 1 : i64, scratch_operands = 0 : i64, tpu.core_type = #tpu.core_type<tc>, window_params = [{transform_indices = @transform_0, window_bounds = array<i64: 2, 1024>}, {transform_indices = @transform_1, window_bounds = array<i64: 2, 1024>}]} {
    %c0 = arith.constant 0 : index
    %c0_0 = arith.constant 0 : index
    %0 = vector.load %arg2[%c0, %c0_0] : memref<2x1024xf32, #tpu.memory_space<vmem>>, vector<2x1024xf32>
    %1 = tpu.iota {dimensions = array<i32: 0>} : vector<2x1024xi32>
    %2 = tpu.iota {dimensions = array<i32: 1>} : vector<2x1024xi32>
    %c2048_i32 = arith.constant 2048 : i32
    %3 = arith.muli %arg0, %c2048_i32 : i32
    %c1024_i32 = arith.constant 1024 : i32
    %4 = vector.broadcast %c1024_i32 : i32 to vector<2x1024xi32>
    %5 = arith.muli %1, %4 : vector<2x1024xi32>
    %6 = vector.broadcast %3 : i32 to vector<2x1024xi32>
    %7 = arith.addi %6, %5 : vector<2x1024xi32>
    %8 = arith.addi %7, %2 : vector<2x1024xi32>
    %c0_1 = arith.constant 0 : index
    %9 = memref.load %arg1[%c0_1] : memref<1xi32, #tpu.memory_space<smem>>
    %c-1640531527_i32 = arith.constant -1640531527 : i32
    %10 = arith.muli %9, %c-1640531527_i32 : i32
    %11 = vector.broadcast %10 : i32 to vector<2x1024xi32>
    %12 = arith.xori %8, %11 : vector<2x1024xi32>
    %c16_i32 = arith.constant 16 : i32
    %13 = vector.broadcast %c16_i32 : i32 to vector<2x1024xi32>
    %14 = arith.shrsi %12, %13 : vector<2x1024xi32>
    %c65535_i32 = arith.constant 65535 : i32
    %15 = vector.broadcast %c65535_i32 : i32 to vector<2x1024xi32>
    %16 = arith.andi %14, %15 : vector<2x1024xi32>
    %17 = arith.xori %12, %16 : vector<2x1024xi32>
    %c569420461_i32 = arith.constant 569420461 : i32
    %18 = vector.broadcast %c569420461_i32 : i32 to vector<2x1024xi32>
    %19 = arith.muli %17, %18 : vector<2x1024xi32>
    %c15_i32 = arith.constant 15 : i32
    %20 = vector.broadcast %c15_i32 : i32 to vector<2x1024xi32>
    %21 = arith.shrsi %19, %20 : vector<2x1024xi32>
    %c131071_i32 = arith.constant 131071 : i32
    %22 = vector.broadcast %c131071_i32 : i32 to vector<2x1024xi32>
    %23 = arith.andi %21, %22 : vector<2x1024xi32>
    %24 = arith.xori %19, %23 : vector<2x1024xi32>
    %c1935289751_i32 = arith.constant 1935289751 : i32
    %25 = vector.broadcast %c1935289751_i32 : i32 to vector<2x1024xi32>
    %26 = arith.muli %24, %25 : vector<2x1024xi32>
    %c15_i32_2 = arith.constant 15 : i32
    %27 = vector.broadcast %c15_i32_2 : i32 to vector<2x1024xi32>
    %28 = arith.shrsi %26, %27 : vector<2x1024xi32>
    %c131071_i32_3 = arith.constant 131071 : i32
    %29 = vector.broadcast %c131071_i32_3 : i32 to vector<2x1024xi32>
    %30 = arith.andi %28, %29 : vector<2x1024xi32>
    %31 = arith.xori %26, %30 : vector<2x1024xi32>
    %c1_i32 = arith.constant 1 : i32
    %32 = vector.broadcast %c1_i32 : i32 to vector<2x1024xi32>
    %33 = arith.shrsi %31, %32 : vector<2x1024xi32>
    %c2147483647_i32 = arith.constant 2147483647 : i32
    %34 = vector.broadcast %c2147483647_i32 : i32 to vector<2x1024xi32>
    %35 = arith.andi %33, %34 : vector<2x1024xi32>
    %c536870912_i32 = arith.constant 536870912 : i32
    %36 = vector.broadcast %c536870912_i32 : i32 to vector<2x1024xi32>
    %37 = arith.cmpi slt, %35, %36 : vector<2x1024xi32>
    %cst = arith.constant 1.000000e+00 : f32
    %38 = vector.broadcast %cst : f32 to vector<2x1024xf32>
    %39 = arith.select %37, %38, %0 : vector<2x1024xi1>, vector<2x1024xf32>
    %c0_4 = arith.constant 0 : index
    %c0_5 = arith.constant 0 : index
    %40 = vector.load %arg3[%c0_4, %c0_5] : memref<2x1024xf32, #tpu.memory_space<vmem>>, vector<2x1024xf32>
    tpu.vector_store %arg3[%c0_4, %c0_5], %39 {strides = array<i32>} : memref<2x1024xf32, #tpu.memory_space<vmem>>, vector<2x1024xf32>,
    return
  }
  func.func @transform_0(%arg0: i32, %arg1: memref<1xi32, #tpu.memory_space<smem>>) -> (i32, i32) {
    %c0_i32 = arith.constant 0 : i32
    %c0_i32_0 = arith.constant 0 : i32
    return %arg0, %c0_i32 : i32, i32
  }
  func.func @transform_1(%arg0: i32, %arg1: memref<1xi32, #tpu.memory_space<smem>>) -> (i32, i32) {
    %c0_i32 = arith.constant 0 : i32
    %c0_i32_0 = arith.constant 0 : i32
    return %arg0, %c0_i32 : i32, i32
  }
}

</mosaic_0001>

<bundles_post_ra>
// kernel: tpu_custom_call.1
= control target key start
LH: loop header
LB: loop body
LE: loop exit
PB: predicated region body
PF: predicated region fallthrough
CT: control target
= control target key end

     0   :  { %8 = vsyncpa [#allocation5], 0  ;;  %s376_s0 = inlined_call_operand.<no memory space> [shape: s32[1], index: 0, kind: input, shape index: {}]   ;;  %s377_s1 = inlined_call_operand.hbm [shape: f32[2,1024], index: 1, kind: input, shape index: {}, may-alias: {1,2}]   ;;  %s378_s2 = inlined_call_operand.hbm [shape: f32[2,1024], index: 2, kind: output, shape index: {}, may-alias: {1,2}]  }
   0x1   :  { %9 = vsyncpa [#allocation6], 0  ;;  %s15_s11 = sshll.u32 %s377_s1, 4  ;;  %s332_s12 = smov [#allocation4]   ;;  %s16_s11 = int_to_ptr.hbm [resolvable:$true] %s15_s11 }
   0x2   :  { %s17_s13 = sshll.u32 %s332_s12, 4  ;;  %s18_s13 = int_to_ptr.vmem [resolvable:$true] %s17_s13 }
   0x3   :  { %20 = dma.hbm_to_vmem [thread:$0]  %s16_s11, 256, %s18_s13, [#allocation5]  }
   0x4   :  { %328 = dma.done.wait [#allocation5], 256  }
   0x5   :  { %329 = vsyncadd [#allocation5], 4294967040  ;;  %v27_v0 = vlaneseq  ;;  %s51_s16 = smul.u32 2654435769, %s376_s0  ;;  %v25_v16 = vld [vmem:[#allocation4] sm:$0xff]  ;;  %v26_v17 = vld [vmem:[#allocation4 + $0x8] sm:$0xff] }
   0x6   :  { %175 = vst [vmem:[#allocation1] ss:$4 sm:$0xff] %v25_v16  ;;  %vm216_vm0 = vcmask 1041408   ;;  %vm218_vm1 = vcmask 1045508   ;;  %vm220_vm2 = vcmask 1043456   ;;  %s333_s0 = smov [#allocation7]  }
   0x7   :  { %v28_v1 = vshrl.u32 %v27_v0, 7  ;;  %v30_v2 = vand.u32 127, %v27_v0  ;;  %v52_v3 = vstv %s51_s16  ;;  %177 = vst [vmem:[#allocation1 + $0x20] ss:$4 sm:$0xff] %v26_v17  ;;  %s234_s1 = sshll.u32 %s333_s0, 4  ;;  %s236_s19 = sshll.u32 %s378_s2, 4  ;;  %s235_s1 = int_to_ptr.vmem [resolvable:$true] %s234_s1  ;;  %s237_s19 = int_to_ptr.hbm [resolvable:$true] %s236_s19 }
   0x9   :  { %v31_v4 = vadd.s32 128, %v30_v2  ;;  %v32_v5 = vadd.s32 256, %v30_v2  ;;  %v33_v6 = vadd.s32 384, %v30_v2  ;;  %v39_v7 = vmul.u32 1024, %v28_v1 }
   0xa   :  { %v34_v8 = vadd.s32 512, %v30_v2  ;;  %v35_v9 = vadd.s32 640, %v30_v2  ;;  %v36_v10 = vadd.s32 768, %v30_v2  ;;  %v37_v11 = vadd.s32 896, %v30_v2 }
   0xb   :  { %v42_v12 = vadd.s32 %v39_v7, %v30_v2  ;;  %v43_v13 = vadd.s32 %v39_v7, %v31_v4  ;;  %v44_v14 = vadd.s32 %v39_v7, %v32_v5  ;;  %v45_v15 = vadd.s32 %v39_v7, %v33_v6 }
   0xc   :  { %v46_v18 = vadd.s32 %v39_v7, %v34_v8  ;;  %v47_v19 = vadd.s32 %v39_v7, %v35_v9  ;;  %v48_v20 = vadd.s32 %v39_v7, %v36_v10  ;;  %v49_v21 = vadd.s32 %v39_v7, %v37_v11 }
   0xd   :  { %v53_v22 = vxor.u32 %v52_v3, %v42_v12  ;;  %v54_v23 = vxor.u32 %v52_v3, %v43_v13  ;;  %v55_v24 = vxor.u32 %v52_v3, %v44_v14  ;;  %v56_v25 = vxor.u32 %v52_v3, %v45_v15  ;;  %v178_v17 = vld.sshfl [vmem:[#allocation1] sm:$0xff pattern:$0x73625140] }
   0xe   :  { %v57_v26 = vxor.u32 %v52_v3, %v46_v18  ;;  %v58_v27 = vxor.u32 %v52_v3, %v47_v19  ;;  %v59_v28 = vxor.u32 %v52_v3, %v48_v20  ;;  %v60_v29 = vxor.u32 %v52_v3, %v49_v21  ;;  %v179_v18 = vld.sshfl [vmem:[#allocation1 + $0x8] sm:$0xff pattern:$0x73625140]  ;;  %v180_v19 = vld.sshfl [vmem:[#allocation1 + $0x10] sm:$0xff pattern:$0x73625140] }
   0xf   :  { %v246_v30 = vshrl.u32 %v53_v22, 16  ;;  %v247_v31 = vshrl.u32 %v54_v23, 16  ;;  %v248_v32 = vshrl.u32 %v55_v24, 16  ;;  %v249_v33 = vshrl.u32 %v56_v25, 16 }
  0x10   :  { %v250_v34 = vshrl.u32 %v57_v26, 16  ;;  %v251_v35 = vshrl.u32 %v58_v27, 16  ;;  %v252_v36 = vshrl.u32 %v59_v28, 16  ;;  %v253_v37 = vshrl.u32 %v60_v29, 16 }
  0x11   :  { %v77_v38 = vxor.u32 %v246_v30, %v53_v22  ;;  %v78_v39 = vxor.u32 %v247_v31, %v54_v23  ;;  %v79_v40 = vxor.u32 %v248_v32, %v55_v24  ;;  %v80_v41 = vxor.u32 %v249_v33, %v56_v25  ;;  %v181_v22 = vld.sshfl [vmem:[#allocation1 + $0x18] sm:$0xff pattern:$0x73625140] }
  0x12   :  { %v81_v42 = vxor.u32 %v250_v34, %v57_v26  ;;  %v82_v46 = vxor.u32 %v251_v35, %v58_v27  ;;  %v83_v48 = vxor.u32 %v252_v36, %v59_v28  ;;  %v84_v49 = vxor.u32 %v253_v37, %v60_v29 }
  0x13   :  { %v85_v43 = vmul.u32 569420461, %v77_v38  ;;  %v86_v44 = vmul.u32 569420461, %v78_v39  ;;  %v87_v45 = vmul.u32 569420461, %v79_v40 }
  0x14   :  { %v88_v47 = vmul.u32 569420461, %v80_v41  ;;  %v89_v54 = vmul.u32 569420461, %v81_v42  ;;  %v90_v58 = vmul.u32 569420461, %v82_v46 }
  0x15   :  { %v254_v50 = vshrl.u32 %v85_v43, 15  ;;  %v255_v51 = vshrl.u32 %v86_v44, 15  ;;  %v256_v52 = vshrl.u32 %v87_v45, 15  ;;  %v91_v60 = vmul.u32 569420461, %v83_v48 }
  0x16   :  { %v257_v53 = vshrl.u32 %v88_v47, 15  ;;  %v92_v61 = vmul.u32 569420461, %v84_v49  ;;  %v258_v62 = vshrl.u32 %v89_v54, 15  ;;  %v259_v3 = vshrl.u32 %v90_v58, 15 }
  0x17   :  { %v109_v55 = vxor.u32 %v254_v50, %v85_v43  ;;  %v110_v56 = vxor.u32 %v255_v51, %v86_v44  ;;  %v111_v57 = vxor.u32 %v256_v52, %v87_v45  ;;  %v260_v4 = vshrl.u32 %v91_v60, 15  ;;  %v184_v50 = vld.sshfl [vmem:[#allocation1 + $0x30] sm:$0xff pattern:$0x73625140] }
  0x18   :  { %v112_v59 = vxor.u32 %v257_v53, %v88_v47  ;;  %v261_v5 = vshrl.u32 %v92_v61, 15  ;;  %v113_v9 = vxor.u32 %v258_v62, %v89_v54  ;;  %v114_v11 = vxor.u32 %v259_v3, %v90_v58  ;;  %v183_v47 = vld.sshfl [vmem:[#allocation1 + $0x28] sm:$0xff pattern:$0x73625140] }
  0x19   :  { %v117_v63 = vmul.u32 1935289751, %v109_v55  ;;  %v118_v0 = vmul.u32 1935289751, %v110_v56  ;;  %v119_v1 = vmul.u32 1935289751, %v111_v57  ;;  %v115_v12 = vxor.u32 %v260_v4, %v91_v60 }
  0x1a   :  { %v120_v2 = vmul.u32 1935289751, %v112_v59  ;;  %v116_v13 = vxor.u32 %v261_v5, %v92_v61  ;;  %v121_v20 = vmul.u32 1935289751, %v113_v9  ;;  %v122_v23 = vmul.u32 1935289751, %v114_v11 }
  0x1b   :  { %v262_v6 = vshrl.u32 %v117_v63, 15  ;;  %v263_v7 = vshrl.u32 %v118_v0, 15  ;;  %v264_v8 = vshrl.u32 %v119_v1, 15  ;;  %v123_v24 = vmul.u32 1935289751, %v115_v12 }
  0x1c   :  { %v265_v10 = vshrl.u32 %v120_v2, 15  ;;  %v124_v25 = vmul.u32 1935289751, %v116_v13  ;;  %v266_v29 = vshrl.u32 %v121_v20, 15  ;;  %v267_v31 = vshrl.u32 %v122_v23, 15 }
  0x1d   :  { %v141_v14 = vxor.u32 %v262_v6, %v117_v63  ;;  %v142_v15 = vxor.u32 %v263_v7, %v118_v0  ;;  %v143_v16 = vxor.u32 %v264_v8, %v119_v1  ;;  %v268_v32 = vshrl.u32 %v123_v24, 15  ;;  %v185_v54 = vld.sshfl [vmem:[#allocation1 + $0x38] sm:$0xff pattern:$0x73625140] }
  0x1e   :  { %v144_v21 = vxor.u32 %v265_v10, %v120_v2  ;;  %v269_v33 = vshrl.u32 %v124_v25, 15  ;;  %v145_v35 = vxor.u32 %v266_v29, %v121_v20  ;;  %v146_v42 = vxor.u32 %v267_v31, %v122_v23  ;;  %v182_v57 = vld.sshfl [vmem:[#allocation1 + $0x20] sm:$0xff pattern:$0x73625140] }
  0x1f   :  { %v270_v26 = vshrl.u32 %v141_v14, 1  ;;  %v271_v27 = vshrl.u32 %v142_v15, 1  ;;  %v272_v28 = vshrl.u32 %v143_v16, 1  ;;  %v147_v44 = vxor.u32 %v268_v32, %v123_v24 }
  0x20   :  { %v273_v30 = vshrl.u32 %v144_v21, 1  ;;  %v148_v45 = vxor.u32 %v269_v33, %v124_v25  ;;  %v274_v46 = vshrl.u32 %v145_v35, 1  ;;  %v275_v49 = vshrl.u32 %v146_v42, 1 }
  0x21   :  { %vm355_vm3 = vcmp.lt.s32.totalorder %v270_v26, 536870912  ;;  %vm166_vm4 = vcmp.lt.s32.totalorder %v271_v27, 536870912  ;;  %vm167_vm5 = vcmp.lt.s32.totalorder %v272_v28, 536870912  ;;  %v276_v52 = vshrl.u32 %v147_v44, 1 }
  0x22   :  { %vm168_vm6 = vcmp.lt.s32.totalorder %v273_v30, 536870912  ;;  %v194_v36 = vsel %vm355_vm3, 1.0, %v178_v17  ;;  %v195_v37 = vsel %vm166_vm4, 1.0, %v179_v18  ;;  %v196_v38 = vsel %vm167_vm5, 1.0, %v180_v19 }
  0x23   :  { %v197_v39 = vsel %vm168_vm6, 1.0, %v181_v22  ;;  %v210_v40 = vrot.slane %v195_v37, 6  ;;  %v211_v41 = vrot.slane %v196_v38, 4  ;;  %v277_v53 = vshrl.u32 %v148_v45, 1 }
  0x24   :  { %v212_v43 = vrot.slane %v197_v39, 2  ;;  %vm364_vm7 = vcmp.lt.s32.totalorder %v274_v46, 536870912  ;;  %vm170_vm8 = vcmp.lt.s32.totalorder %v275_v49, 536870912  ;;  %vm171_vm9 = vcmp.lt.s32.totalorder %v276_v52, 536870912 }
  0x25   :  { %v217_v48 = vsel %vm216_vm0, %v194_v36, %v210_v40  ;;  %vm172_vm10 = vcmp.lt.s32.totalorder %v277_v53, 536870912  ;;  %v199_v58 = vsel %vm170_vm8, 1.0, %v183_v47  ;;  %v200_v59 = vsel %vm171_vm9, 1.0, %v184_v50 }
  0x26   :  { %v219_v51 = vsel %vm218_vm1, %v211_v41, %v212_v43  ;;  %v201_v60 = vsel %vm172_vm10, 1.0, %v185_v54  ;;  %v213_v61 = vrot.slane %v199_v58, 6  ;;  %v198_v62 = vsel %vm364_vm7, 1.0, %v182_v57 }
  0x27   :  { %v221_v55 = vsel %vm220_vm2, %v217_v48, %v219_v51  ;;  %v214_v63 = vrot.slane %v200_v59, 4  ;;  %v215_v0 = vrot.slane %v201_v60, 2 }
  0x28   :  { %227 = vst [vmem:[#allocation7] sm:$0xff] %v221_v55  ;;  %v222_v1 = vsel %vm216_vm0, %v198_v62, %v213_v61 }
  0x29   :  { %v223_v2 = vsel %vm218_vm1, %v214_v63, %v215_v0 }
  0x2a   :  { %v224_v3 = vsel %vm220_vm2, %v222_v1, %v223_v2 }
  0x2b   :  { %228 = vst [vmem:[#allocation7 + $0x8] sm:$0xff] %v224_v3 }
  0x2c   :  { %239 = dma.vmem_to_hbm [thread:$0]  %s235_s1, 256, %s237_s19, [#allocation6]  }
  0x2d   :  { %330 = dma.done.wait [#allocation6], 256  }
  0x2e   :  { %331 = vsyncadd [#allocation6], 4294967040 }
  0x2f   :  { %244 = vsyncpa [#allocation5], 1 }
  0x30   :  { %245 = vsyncpa [#allocation6], 1 }

</bundles_post_ra>
